<compile_context>
chip_gen: v5e
topology: v5e:2x2
jax: 0.10.0
libtpu: 0.0.40
codegen_flags: <defaults>
</compile_context>

<pallas_src>
import functools
import math

import jax
import jax.numpy as jnp
from jax.experimental import pallas as pl
from jax.experimental.pallas import tpu as pltpu


def _locked_dropout_kernel(mask_ref, x_ref, o_ref):
    # mask_ref: (B, H) resident across the whole grid; x_ref/o_ref: (B, tT, H).
    # Broadcast the mask over the time axis -- identical mask for every step.
    o_ref[...] = x_ref[...] * mask_ref[...][:, None, :]


def _choose_tile_t(B, T, H, itemsize, tile_budget_bytes=4 * 1024 * 1024):
    """Pick a T tile: big enough to amortize per-step overhead, small enough
    that double-buffered in+out tiles fit comfortably in scoped VMEM on every
    TPU generation (incl. v7x's smaller VMEM)."""
    if T <= 8:
        return T
    max_t = max(8, tile_budget_bytes // max(1, B * H * itemsize))
    t_tile = min(T, max_t)
    if t_tile < T:
        # Second-minor block dim must be a multiple of 8 (f32 sublane) unless
        # it equals the full dim.
        t_tile = max(8, (t_tile // 8) * 8)
    return t_tile


def locked_dropout(x, seed, dropout=0.5, training=True):
    """JAX/Pallas equivalent of LockedDropout.forward for dense (B, T, H) inputs.

    If not training or dropout == 0, returns x unchanged (like the reference).
    """
    if (not training) or dropout == 0.0:
        return x

    keep_prob = 1.0 - float(dropout)
    B, T, H = x.shape

    # (B, H) Bernoulli(keep_prob) / keep_prob mask, shared across all T steps.
    # Generated host-side with jax.random (tiny array); cast once to x.dtype
    # so the kernel multiplies in the input dtype (no in-kernel upcast).
    key = jax.random.PRNGKey(seed) if isinstance(seed, int) else seed
    keep = jax.random.bernoulli(key, p=keep_prob, shape=(B, H))
    mask = keep.astype(x.dtype) * jnp.asarray(1.0 / keep_prob, dtype=x.dtype)

    t_tile = _choose_tile_t(B, T, H, x.dtype.itemsize)
    grid = (pl.cdiv(T, t_tile),)

    return pl.pallas_call(
        _locked_dropout_kernel,
        out_shape=jax.ShapeDtypeStruct(x.shape, x.dtype),
        grid=grid,
        in_specs=[
            # Mask block index never changes -> fetched once, stays resident.
            pl.BlockSpec((B, H), lambda t: (0, 0)),
            pl.BlockSpec((B, t_tile, H), lambda t: (0, t, 0)),
        ],
        out_specs=pl.BlockSpec((B, t_tile, H), lambda t: (0, t, 0)),
        compiler_params=pltpu.CompilerParams(
            dimension_semantics=("parallel",),
        ),
    )(mask, x)


# TODO(synk): the PackedSequence branch of the reference (ragged packed data)
# has no clean Pallas equivalent; only the dense-tensor path is implemented.


if __name__ == "__main__":
    B, T, H = 2, 8, 32
    key = jax.random.PRNGKey(0)
    x = jax.random.normal(key, (B, T, H), dtype=jnp.float32)

    y = locked_dropout(x, seed=1234, dropout=0.5, training=True)
    y = jax.block_until_ready(y)

    # Sanity: mask must be identical across the time axis ("locked") and each
    # element must be either 0 or x / keep_prob.
    ratio = jnp.where(x != 0, y / x, 0.0)
    locked = jnp.all(jnp.abs(ratio - ratio[:, :1, :]) < 1e-5)
    valid_vals = jnp.all(
        (jnp.abs(ratio) < 1e-5) | (jnp.abs(ratio - 2.0) < 1e-5)
    )
    # Eval mode passthrough.
    y_eval = locked_dropout(x, seed=1234, dropout=0.5, training=False)
    passthrough = jnp.all(y_eval == x)

    assert bool(locked), "mask not shared across time steps"
    assert bool(valid_vals), "mask values not in {0, 1/keep_prob}"
    assert bool(passthrough), "eval mode should be identity"
    print("KERNEL_OK")
</pallas_src>

<mosaic_0001>
module attributes {stable_mosaic.version = 11 : i64} {
  func.func @_locked_dropout_kernel(%arg0: i32, %arg1: memref<2x32xf32, #tpu.memory_space<vmem>>, %arg2: memref<2x8x32xf32, #tpu.memory_space<vmem>>, %arg3: memref<2x8x32xf32, #tpu.memory_space<vmem>>) attributes {dimension_semantics = [#tpu.dimension_semantics<parallel>], iteration_bounds = array<i64: 1>, scalar_prefetch = 0 : i64, scratch_operands = 0 : i64, tpu.core_type = #tpu.core_type<tc>, window_params = [{pipeline_mode = #tpu.pipeline_mode<synchronous>, transform_indices = @transform_0, window_bounds = array<i64: 2, 32>}, {transform_indices = @transform_1, window_bounds = array<i64: 2, 8, 32>}, {transform_indices = @transform_2, window_bounds = array<i64: 2, 8, 32>}]} {
    %c0 = arith.constant 0 : index
    %c0_0 = arith.constant 0 : index
    %c0_1 = arith.constant 0 : index
    %0 = vector.load %arg2[%c0, %c0_0, %c0_1] : memref<2x8x32xf32, #tpu.memory_space<vmem>>, vector<2x8x32xf32>
    %c0_2 = arith.constant 0 : index
    %c0_3 = arith.constant 0 : index
    %1 = vector.load %arg1[%c0_2, %c0_3] : memref<2x32xf32, #tpu.memory_space<vmem>>, vector<2x32xf32>
    %2 = vector.shape_cast %1 : vector<2x32xf32> to vector<2x1x32xf32>
    %3 = vector.broadcast %2 : vector<2x1x32xf32> to vector<2x8x32xf32>
    %4 = arith.mulf %0, %3 : vector<2x8x32xf32>
    %c0_4 = arith.constant 0 : index
    %c0_5 = arith.constant 0 : index
    %c0_6 = arith.constant 0 : index
    %5 = vector.load %arg3[%c0_4, %c0_5, %c0_6] : memref<2x8x32xf32, #tpu.memory_space<vmem>>, vector<2x8x32xf32>
    tpu.vector_store %arg3[%c0_4, %c0_5, %c0_6], %4 {strides = array<i32>} : memref<2x8x32xf32, #tpu.memory_space<vmem>>, vector<2x8x32xf32>,
    return
  }
  func.func @transform_0(%arg0: i32) -> (i32, i32) {
    %c0_i32 = arith.constant 0 : i32
    %c0_i32_0 = arith.constant 0 : i32
    %c0_i32_1 = arith.constant 0 : i32
    return %c0_i32, %c0_i32_0 : i32, i32
  }
  func.func @transform_1(%arg0: i32) -> (i32, i32, i32) {
    %c0_i32 = arith.constant 0 : i32
    %c0_i32_0 = arith.constant 0 : i32
    %c0_i32_1 = arith.constant 0 : i32
    return %c0_i32, %arg0, %c0_i32_0 : i32, i32, i32
  }
  func.func @transform_2(%arg0: i32) -> (i32, i32, i32) {
    %c0_i32 = arith.constant 0 : i32
    %c0_i32_0 = arith.constant 0 : i32
    %c0_i32_1 = arith.constant 0 : i32
    return %c0_i32, %arg0, %c0_i32_0 : i32, i32, i32
  }
}

</mosaic_0001>

<bundles_post_ra>
// kernel: tpu_custom_call.1
= control target key start
LH: loop header
LB: loop body
LE: loop exit
PB: predicated region body
PF: predicated region fallthrough
CT: control target
= control target key end

     0   :  { %7 = vsyncpa [#allocation3], 0  ;;  %s188_s0 = inlined_call_operand.hbm [shape: f32[2,32], index: 0, kind: input, shape index: {}]   ;;  %s189_s1 = inlined_call_operand.hbm [shape: f32[2,8,32], index: 1, kind: input, shape index: {}]   ;;  %s190_s2 = inlined_call_operand.hbm [shape: f32[2,8,32], index: 2, kind: output, shape index: {}]  }
   0x1   :  { %8 = vsyncpa [#allocation6], 0 }
   0x2   :  { %9 = vsyncpa [#allocation4], 0  ;;  %s15_s11 = sshll.u32 %s188_s0, 4  ;;  %s159_s12 = smov [#allocation2]   ;;  %s16_s11 = int_to_ptr.hbm [resolvable:$true] %s15_s11 }
   0x3   :  { %s17_s13 = sshll.u32 %s159_s12, 4  ;;  %s25_s16 = sshll.u32 %s189_s1, 4  ;;  %s18_s13 = int_to_ptr.vmem [resolvable:$true] %s17_s13  ;;  %s26_s16 = int_to_ptr.hbm [resolvable:$true] %s25_s16 }
   0x4   :  { %20 = dma.hbm_to_vmem [thread:$0]  %s16_s11, 32, %s18_s13, [#allocation3]  }
   0x5   :  { %s160_s17 = smov [#allocation5]   ;;  %s161_s19 = smov 128  }
   0x6   :  { %s27_s18 = sshll.u32 %s160_s17, 4  ;;  %s162_s20 = smov 8   ;;  %s28_s18 = int_to_ptr.vmem [resolvable:$true] %s27_s18 }
   0x7   :  { %33 = dma.hbm_to_vmem [thread:$0]  %s26_s16, 256, %s28_s18, [#allocation6], %s161_s19, %s161_s19, %s162_s20  }
   0x8   :  { %153 = dma.done.wait [#allocation3], 32  }
   0x9   :  { %154 = vsyncadd [#allocation3], 4294967264 }
   0xa   :  { %155 = dma.done.wait [#allocation6], 256  }
   0xb   :  { %156 = vsyncadd [#allocation6], 4294967040  ;;  %v42_v0 = vld [vmem:[#allocation5] sm:$0xff]  ;;  %v44_v1 = vld [vmem:[#allocation2] sm:$0x3]  ;;  %vm53_vm0 = vcmask 261120  }
   0xc   :  { %v47_v2 = vperm.slane %v44_v1, 0  ;;  %v46_v3 = vrot.slane %v44_v1, 1  ;;  %v43_v4 = vld [vmem:[#allocation5 + $0x8] sm:$0xff]  ;;  %s163_s0 = smov [#allocation7]   ;;  %s62_s23 = sshll.u32 %s190_s2, 4  ;;  %s63_s23 = int_to_ptr.hbm [resolvable:$true] %s62_s23 }
   0xd   :  { %s60_s1 = sshll.u32 %s163_s0, 4  ;;  %s61_s1 = int_to_ptr.vmem [resolvable:$true] %s60_s1 }
   0xe   :  { %v51_v5 = vmul.f32 %v47_v2, %v42_v0  ;;  %v48_v6 = vperm.slane %v46_v3, 0 }
  0x10   :  { %54 = vst.msk [vmem:[#allocation7] sm:$0xff] %vm53_vm0, %v51_v5  ;;  %v52_v7 = vmul.f32 %v48_v6, %v43_v4 }
  0x12   :  { %55 = vst.msk [vmem:[#allocation7 + $0x8] sm:$0xff] %vm53_vm0, %v52_v7 }
  0x13   :  { %68 = dma.vmem_to_hbm [thread:$0]  %s61_s1, 256, %s63_s23, [#allocation4], %s161_s19, %s161_s19, %s162_s20  }
  0x14   :  { %157 = dma.done.wait [#allocation4], 256  }
  0x15   :  { %158 = vsyncadd [#allocation4], 4294967040 }
  0x16   :  { %73 = vsyncpa [#allocation3], 1 }
  0x17   :  { %74 = vsyncpa [#allocation6], 1 }
  0x18   :  { %75 = vsyncpa [#allocation4], 1 }

</bundles_post_ra>
